<compile_context>
chip_gen: v7x
topology: tpu7x:2x2x1
jax: 0.10.0
libtpu: 0.0.40
codegen_flags: <defaults>
</compile_context>

<pallas_src>
import functools

import jax
import jax.numpy as jnp
from jax.experimental import pallas as pl
from jax.experimental.pallas import tpu as pltpu

_LANE = 512            # lane-dense last dim (multiple of 128)
_MAX_TILE_ROWS = 1024  # 1024 x 512 f32 = 2 MiB per input block


def _elementwise_loss(d, loss_type):
    """Per-element loss on the (already masked) difference d = (input - target) * mask."""
    if loss_type == "mse":            # torch.nn.MSELoss
        return d * d
    if loss_type == "l1":             # torch.nn.L1Loss
        return jnp.abs(d)
    if loss_type == "smooth_l1":      # torch.nn.SmoothL1Loss (beta = 1.0)
        ad = jnp.abs(d)
        return jnp.where(ad < 1.0, 0.5 * d * d, ad - 0.5)
    raise ValueError(f"unsupported loss_type: {loss_type}")


def _masked_loss_kernel(x_ref, t_ref, out_ref, acc_ref, *,
                        ignore_value, loss_type, tile_rows, last_block_rows):
    k = pl.program_id(0)
    nk = pl.num_programs(0)

    @pl.when(k == 0)
    def _init():
        acc_ref[...] = jnp.zeros_like(acc_ref)

    # Stream native-dtype blocks; upcast in vregs (free filler on this memory-bound kernel).
    x = x_ref[...].astype(jnp.float32)
    t = t_ref[...].astype(jnp.float32)

    # mask fused into a select: input*mask - target*mask == where(t != ignore, x - t, 0)
    # NOTE: exact float equality against ignore_index (exact for integer-valued ignore indices).
    d = jnp.where(t == ignore_value, 0.0, x - t)
    per = _elementwise_loss(d, loss_type)

    if last_block_rows != tile_rows:
        # Only the last grid step has rows past the true end of the data; its DMA is clipped, so
        # those rows hold stale VMEM -> zero their contribution before accumulating.
        valid_rows = jnp.where(k == nk - 1, last_block_rows, tile_rows)
        row = jax.lax.broadcasted_iota(jnp.int32, per.shape, 0)
        per = jnp.where(row < valid_rows, per, 0.0)

    # Vector-wide accumulator: pure VPU adds, no per-step cross-lane reduce / scalar carry.
    acc_ref[...] += per

    @pl.when(k == nk - 1)
    def _finalize():
        s = jnp.sum(acc_ref[...], keepdims=True)        # single XLU reduce, epilogue only
        out_ref[...] = jnp.broadcast_to(s, out_ref.shape)


def _masked_loss_sum_jnp(x, t, ignore_value, loss_type):
    """Plain-jnp sum of masked per-element losses (used for tiny tails / tiny inputs)."""
    xf = x.astype(jnp.float32)
    tf = t.astype(jnp.float32)
    d = jnp.where(tf == ignore_value, 0.0, xf - tf)
    return jnp.sum(_elementwise_loss(d, loss_type))


def _sublane_multiple(dtype):
    # min second-to-last tile dim: 8 for 32-bit, 16 for 16-bit, 32 for 8-bit dtypes
    return max(8, 32 // jnp.dtype(dtype).itemsize)


@functools.partial(jax.jit, static_argnames=("ignore_index", "loss_type"))
def masked_loss(inputs, targets, *, ignore_index, loss_type="mse"):
    """Forward of _MaskingLossWrapper(inner_loss, ignore_index) for elementwise inner losses.

    The 'mean' divides by the TOTAL element count (ignored positions contribute 0 to the numerator
    but still count in the denominator), exactly like masking + torch's 'mean' reduction.
    """
    assert inputs.shape == targets.shape, "elementwise losses require matching shapes"
    x = inputs.reshape(-1)
    t = targets.reshape(-1)
    numel = x.shape[0]

    mult = max(_sublane_multiple(x.dtype), _sublane_multiple(t.dtype))
    rows = numel // _LANE                      # number of full 512-wide rows
    tail = numel - rows * _LANE                # < 512 leftover elements

    total = jnp.float32(0.0)
    if rows >= mult:
        n_main = rows * _LANE
        x_main = x if tail == 0 else x[:n_main]   # no-op reshape when numel % 512 == 0
        t_main = t if tail == 0 else t[:n_main]
        x2 = x_main.reshape(rows, _LANE)
        t2 = t_main.reshape(rows, _LANE)

        tile_rows = min(_MAX_TILE_ROWS, (rows // mult) * mult)   # tile_rows <= rows, aligned
        nb = pl.cdiv(rows, tile_rows)
        last_block_rows = rows - (nb - 1) * tile_rows

        kernel = functools.partial(
            _masked_loss_kernel,
            ignore_value=float(ignore_index),
            loss_type=loss_type,
            tile_rows=tile_rows,
            last_block_rows=last_block_rows,
        )
        bytes_accessed = rows * _LANE * (x2.dtype.itemsize + t2.dtype.itemsize) + 8 * 128 * 4

        out = pl.pallas_call(
            kernel,
            out_shape=jax.ShapeDtypeStruct((8, 128), jnp.float32),
            grid=(nb,),
            in_specs=[pl.BlockSpec((tile_rows, _LANE), lambda k: (k, 0)),
                      pl.BlockSpec((tile_rows, _LANE), lambda k: (k, 0))],
            out_specs=pl.BlockSpec((8, 128), lambda k: (0, 0)),
            scratch_shapes=[pltpu.VMEM((tile_rows, _LANE), jnp.float32)],
            compiler_params=pltpu.CompilerParams(
                dimension_semantics=("arbitrary",)),   # reduction axis carries the accumulator
            cost_estimate=pl.CostEstimate(
                flops=4 * rows * _LANE,
                transcendentals=0,
                bytes_accessed=int(bytes_accessed)),
        )(x2, t2)
        total = out[0, 0]
        start_tail = n_main
    else:
        start_tail = 0   # too small for a single tile: handle everything in plain jnp below

    if start_tail < numel:
        total = total + _masked_loss_sum_jnp(
            x[start_tail:], t[start_tail:], float(ignore_index), loss_type)

    return total / jnp.float32(numel)


def _reference(inputs, targets, ignore_index, loss_type="mse"):
    """Pure-JAX mirror of the PyTorch wrapper + inner elementwise loss ('mean' reduction)."""
    m = (targets != ignore_index).astype(jnp.float32)
    xi = inputs.astype(jnp.float32) * m
    ti = targets.astype(jnp.float32) * m
    return jnp.mean(_elementwise_loss(xi - ti, loss_type))


if __name__ == "__main__":
    key = jax.random.PRNGKey(0)
    ks = jax.random.split(key, 12)
    ignore_index = -1.0

    # Primary: small 3D U-Net style volume (N, C, D, H, W); numel % 512 == 0 -> zero-copy path.
    shape = (2, 4, 8, 16, 16)
    x = jax.random.normal(ks[0], shape, dtype=jnp.float32)
    t = jax.random.uniform(ks[1], shape, dtype=jnp.float32)
    t = jnp.where(jax.random.bernoulli(ks[2], 0.3, shape), jnp.float32(ignore_index), t)
    for lt in ("mse", "l1", "smooth_l1"):
        got = jax.block_until_ready(masked_loss(x, t, ignore_index=ignore_index, loss_type=lt))
        ref = _reference(x, t, ignore_index, lt)
        assert jnp.allclose(got, ref, atol=1e-6, rtol=1e-5), (lt, float(got), float(ref))

    # Non-divisible numel: exercises the masked last row-block + plain-jnp tail path.
    shape2 = (2, 3, 9, 13, 7)
    x2 = jax.random.normal(ks[3], shape2, dtype=jnp.float32)
    t2 = jax.random.uniform(ks[4], shape2, dtype=jnp.float32)
    t2 = jnp.where(jax.random.bernoulli(ks[5], 0.25, shape2), jnp.float32(ignore_index), t2)
    got2 = jax.block_until_ready(masked_loss(x2, t2, ignore_index=ignore_index, loss_type="mse"))
    ref2 = _reference(x2, t2, ignore_index, "mse")
    assert jnp.allclose(got2, ref2, atol=1e-6, rtol=1e-5), (float(got2), float(ref2))

    # bf16 inputs: exercises in-kernel upcast (no wrapper-side f32 copies), 16-sublane tiling.
    shape3 = (2, 4, 8, 16, 32)
    x3 = jax.random.normal(ks[6], shape3, dtype=jnp.bfloat16)
    t3 = jax.random.uniform(ks[7], shape3, dtype=jnp.bfloat16)
    t3 = jnp.where(jax.random.bernoulli(ks[8], 0.3, shape3), jnp.bfloat16(ignore_index), t3)
    got3 = jax.block_until_ready(masked_loss(x3, t3, ignore_index=ignore_index, loss_type="mse"))
    ref3 = _reference(x3, t3, ignore_index, "mse")
    assert jnp.allclose(got3, ref3, atol=1e-4, rtol=1e-4), (float(got3), float(ref3))

    # Multi-step grid (rows > tile_rows) with a partially-valid last block.
    shape4 = (2, 6, 64, 32, 32)
    x4 = jax.random.normal(ks[9], shape4, dtype=jnp.float32)
    t4 = jax.random.uniform(ks[10], shape4, dtype=jnp.float32)
    t4 = jnp.where(jax.random.bernoulli(ks[11], 0.5, shape4), jnp.float32(ignore_index), t4)
    got4 = jax.block_until_ready(
        masked_loss(x4, t4, ignore_index=ignore_index, loss_type="smooth_l1"))
    ref4 = _reference(x4, t4, ignore_index, "smooth_l1")
    assert jnp.allclose(got4, ref4, atol=1e-6, rtol=1e-4), (float(got4), float(ref4))

    print("KERNEL_OK")
</pallas_src>

<mosaic_0001>
module attributes {stable_mosaic.version = 11 : i64} {
  func.func @_masked_loss_kernel(%arg0: i32, %arg1: memref<32x512xf32, #tpu.memory_space<vmem>>, %arg2: memref<32x512xf32, #tpu.memory_space<vmem>>, %arg3: memref<8x128xf32, #tpu.memory_space<vmem>>, %arg4: memref<32x512xf32, #tpu.memory_space<vmem>>) attributes {dimension_semantics = [#tpu.dimension_semantics<arbitrary>], iteration_bounds = array<i64: 1>, scalar_prefetch = 0 : i64, scratch_operands = 1 : i64, tpu.core_type = #tpu.core_type<tc>, window_params = [{transform_indices = @transform_0, window_bounds = array<i64: 32, 512>}, {transform_indices = @transform_1, window_bounds = array<i64: 32, 512>}, {pipeline_mode = #tpu.pipeline_mode<synchronous>, transform_indices = @transform_2, window_bounds = array<i64: 8, 128>}]} {
    %c0_i32 = arith.constant 0 : i32
    %0 = arith.cmpi eq, %arg0, %c0_i32 : i32
    %1 = arith.extui %0 : i1 to i32
    %c0_i32_0 = arith.constant 0 : i32
    %2 = arith.cmpi ne, %1, %c0_i32_0 : i32
    scf.if %2 {
      %cst_11 = arith.constant 0.000000e+00 : f32
      %17 = vector.broadcast %cst_11 : f32 to vector<32x512xf32>
      %c0_12 = arith.constant 0 : index
      %c0_13 = arith.constant 0 : index
      %18 = vector.load %arg4[%c0_12, %c0_13] : memref<32x512xf32, #tpu.memory_space<vmem>>, vector<32x512xf32>
      tpu.vector_store %arg4[%c0_12, %c0_13], %17 {strides = array<i32>} : memref<32x512xf32, #tpu.memory_space<vmem>>, vector<32x512xf32>,
    } else {
    }
    %c0 = arith.constant 0 : index
    %c0_1 = arith.constant 0 : index
    %3 = vector.load %arg1[%c0, %c0_1] : memref<32x512xf32, #tpu.memory_space<vmem>>, vector<32x512xf32>
    %c0_2 = arith.constant 0 : index
    %c0_3 = arith.constant 0 : index
    %4 = vector.load %arg2[%c0_2, %c0_3] : memref<32x512xf32, #tpu.memory_space<vmem>>, vector<32x512xf32>
    %cst = arith.constant -1.000000e+00 : f32
    %5 = vector.broadcast %cst : f32 to vector<32x512xf32>
    %6 = arith.cmpf oeq, %4, %5 : vector<32x512xf32>
    %7 = arith.subf %3, %4 : vector<32x512xf32>
    %cst_4 = arith.constant 0.000000e+00 : f32
    %8 = vector.broadcast %cst_4 : f32 to vector<32x512xf32>
    %9 = arith.select %6, %8, %7 : vector<32x512xi1>, vector<32x512xf32>
    %10 = arith.mulf %9, %9 : vector<32x512xf32>
    %c0_5 = arith.constant 0 : index
    %c0_6 = arith.constant 0 : index
    %11 = vector.load %arg4[%c0_5, %c0_6] : memref<32x512xf32, #tpu.memory_space<vmem>>, vector<32x512xf32>
    %12 = arith.addf %11, %10 : vector<32x512xf32>
    %c0_7 = arith.constant 0 : index
    %c0_8 = arith.constant 0 : index
    %13 = vector.load %arg4[%c0_7, %c0_8] : memref<32x512xf32, #tpu.memory_space<vmem>>, vector<32x512xf32>
    tpu.vector_store %arg4[%c0_7, %c0_8], %12 {strides = array<i32>} : memref<32x512xf32, #tpu.memory_space<vmem>>, vector<32x512xf32>,
    %c0_i32_9 = arith.constant 0 : i32
    %14 = arith.cmpi eq, %arg0, %c0_i32_9 : i32
    %15 = arith.extui %14 : i1 to i32
    %c0_i32_10 = arith.constant 0 : i32
    %16 = arith.cmpi ne, %15, %c0_i32_10 : i32
    scf.if %16 {
      %c0_11 = arith.constant 0 : index
      %c0_12 = arith.constant 0 : index
      %17 = vector.load %arg4[%c0_11, %c0_12] : memref<32x512xf32, #tpu.memory_space<vmem>>, vector<32x512xf32>
      %18 = vector.shape_cast %17 : vector<32x512xf32> to vector<1x32x512xf32>
      %cst_13 = arith.constant dense<0.000000e+00> : vector<1xf32>
      %19 = vector.multi_reduction <add>, %18, %cst_13 [1, 2] : vector<1x32x512xf32> to vector<1xf32>
      %20 = vector.shape_cast %19 : vector<1xf32> to vector<1x1x1xf32>
      %21 = vector.extract %20[0, 0, 0] : f32 from vector<1x1x1xf32>
      %22 = vector.broadcast %21 : f32 to vector<1x1xf32>
      %23 = vector.shape_cast %22 : vector<1x1xf32> to vector<1x1xf32>
      %24 = vector.broadcast %23 : vector<1x1xf32> to vector<8x128xf32>
      %c0_14 = arith.constant 0 : index
      %c0_15 = arith.constant 0 : index
      %25 = vector.load %arg3[%c0_14, %c0_15] : memref<8x128xf32, #tpu.memory_space<vmem>>, vector<8x128xf32>
      tpu.vector_store %arg3[%c0_14, %c0_15], %24 {strides = array<i32>} : memref<8x128xf32, #tpu.memory_space<vmem>>, vector<8x128xf32>,
    } else {
    }
    return
  }
  func.func @transform_0(%arg0: i32) -> (i32, i32) {
    %c0_i32 = arith.constant 0 : i32
    %c0_i32_0 = arith.constant 0 : i32
    return %arg0, %c0_i32 : i32, i32
  }
  func.func @transform_1(%arg0: i32) -> (i32, i32) {
    %c0_i32 = arith.constant 0 : i32
    %c0_i32_0 = arith.constant 0 : i32
    return %arg0, %c0_i32 : i32, i32
  }
  func.func @transform_2(%arg0: i32) -> (i32, i32) {
    %c0_i32 = arith.constant 0 : i32
    %c0_i32_0 = arith.constant 0 : i32
    %c0_i32_1 = arith.constant 0 : i32
    return %c0_i32, %c0_i32_0 : i32, i32
  }
}

</mosaic_0001>

<bundles_post_ra>
// kernel: masked_loss.1
= control target key start
LH: loop header
LB: loop body
LE: loop exit
PB: predicated region body
PF: predicated region fallthrough
CT: control target
= control target key end

     0   :  { %s340_s0 = inlined_call_operand.vmem [shape: f32[32,512], index: 0, kind: input, shape index: {}]   ;;  %s341_s1 = inlined_call_operand.vmem [shape: f32[32,512], index: 1, kind: input, shape index: {}]   ;;  %s342_s2 = inlined_call_operand.vmem [shape: f32[8,128], index: 2, kind: output, shape index: {}]  }
   0x1   :  { %v31_v0 = vld [vmem:[%s340_s0] sm:$0xff]  ;;  %v32_v1 = vld [vmem:[%s340_s0 + $0x8] sm:$0xff]  ;;  %v33_v4 = vld [vmem:[%s340_s0 + $0x10] sm:$0xff] }
   0x2   :  { %v47_v2 = vld [vmem:[%s341_s1] sm:$0xff]  ;;  %v48_v3 = vld [vmem:[%s341_s1 + $0x8] sm:$0xff]  ;;  %v49_v5 = vld [vmem:[%s341_s1 + $0x10] sm:$0xff] }
   0x3   :  { %v79_v6 = vsub.f32 %v31_v0, %v47_v2  ;;  %v80_v7 = vsub.f32 %v32_v1, %v48_v3  ;;  %v34_v8 = vld [vmem:[%s340_s0 + $0x18] sm:$0xff]  ;;  %vm63_vm0 = vcmp.eq.f32.partialorder %v47_v2, -1.0  ;;  %vm64_vm1 = vcmp.eq.f32.partialorder %v48_v3, -1.0  ;;  %v35_v11 = vld [vmem:[%s340_s0 + $0x20] sm:$0xff]  ;;  %v36_v16 = vld [vmem:[%s340_s0 + $0x28] sm:$0xff] }
   0x4   :  { %v50_v9 = vld [vmem:[%s341_s1 + $0x18] sm:$0xff]  ;;  %v81_v10 = vsub.f32 %v33_v4, %v49_v5  ;;  %v51_v12 = vld [vmem:[%s341_s1 + $0x20] sm:$0xff]  ;;  %vm65_vm2 = vcmp.eq.f32.partialorder %v49_v5, -1.0  ;;  %v52_v17 = vld [vmem:[%s341_s1 + $0x28] sm:$0xff] }
   0x5   :  { %v82_v13 = vsub.f32 %v34_v8, %v50_v9  ;;  %v95_v14 = vsel %vm63_vm0, 0.0, %v79_v6  ;;  %v96_v15 = vsel %vm64_vm1, 0.0, %v80_v7  ;;  %vm66_vm3 = vcmp.eq.f32.partialorder %v50_v9, -1.0  ;;  %v37_v20 = vld [vmem:[%s340_s0 + $0x30] sm:$0xff]  ;;  %v38_v26 = vld [vmem:[%s340_s0 + $0x38] sm:$0xff]  ;;  %v39_v31 = vld [vmem:[%s340_s0 + $0x40] sm:$0xff] }
   0x6   :  { %v83_v18 = vsub.f32 %v35_v11, %v51_v12  ;;  %v97_v19 = vsel %vm65_vm2, 0.0, %v81_v10  ;;  %v53_v21 = vld [vmem:[%s341_s1 + $0x30] sm:$0xff]  ;;  %vm67_vm4 = vcmp.eq.f32.partialorder %v51_v12, -1.0  ;;  %v111_v22 = vmul.f32 %v95_v14, %v95_v14  ;;  %v54_v27 = vld [vmem:[%s341_s1 + $0x38] sm:$0xff]  ;;  %v55_v32 = vld [vmem:[%s341_s1 + $0x40] sm:$0xff] }
   0x7   :  { %v112_v23 = vmul.f32 %v96_v15, %v96_v15  ;;  %v84_v24 = vsub.f32 %v36_v16, %v52_v17  ;;  %v98_v25 = vsel %vm66_vm3, 0.0, %v82_v13  ;;  %vm68_vm5 = vcmp.eq.f32.partialorder %v52_v17, -1.0  ;;  %v40_v37 = vld [vmem:[%s340_s0 + $0x48] sm:$0xff]  ;;  %v41_v43 = vld [vmem:[%s340_s0 + $0x50] sm:$0xff]  ;;  %v42_v49 = vld [vmem:[%s340_s0 + $0x58] sm:$0xff] }
   0x8   :  { %v113_v28 = vmul.f32 %v97_v19, %v97_v19  ;;  %v85_v29 = vsub.f32 %v37_v20, %v53_v21  ;;  %v99_v30 = vsel %vm67_vm4, 0.0, %v83_v18  ;;  %vm69_vm6 = vcmp.eq.f32.partialorder %v53_v21, -1.0  ;;  %v56_v38 = vld [vmem:[%s341_s1 + $0x48] sm:$0xff]  ;;  %v57_v44 = vld [vmem:[%s341_s1 + $0x50] sm:$0xff]  ;;  %v58_v50 = vld [vmem:[%s341_s1 + $0x58] sm:$0xff] }
   0x9   :  { %v114_v33 = vmul.f32 %v98_v25, %v98_v25  ;;  %v194_v34 = vadd.f32 %v112_v23, %v111_v22  ;;  %v86_v35 = vsub.f32 %v38_v26, %v54_v27  ;;  %v100_v36 = vsel %vm68_vm5, 0.0, %v84_v24  ;;  %v43_v55 = vld [vmem:[%s340_s0 + $0x60] sm:$0xff]  ;;  %v44_v61 = vld [vmem:[%s340_s0 + $0x68] sm:$0xff]  ;;  %v45_v3 = vld [vmem:[%s340_s0 + $0x70] sm:$0xff] }
   0xa   :  { %vm70_vm7 = vcmp.eq.f32.partialorder %v54_v27, -1.0  ;;  %v115_v39 = vmul.f32 %v99_v30, %v99_v30  ;;  %v87_v41 = vsub.f32 %v39_v31, %v55_v32  ;;  %v101_v42 = vsel %vm69_vm6, 0.0, %v85_v29  ;;  %v59_v56 = vld [vmem:[%s341_s1 + $0x60] sm:$0xff]  ;;  %v60_v62 = vld [vmem:[%s341_s1 + $0x68] sm:$0xff]  ;;  %v61_v4 = vld [vmem:[%s341_s1 + $0x70] sm:$0xff] }
   0xb   :  { %v195_v40 = vadd.f32 %v194_v34, %v113_v28  ;;  %vm71_vm8 = vcmp.eq.f32.partialorder %v55_v32, -1.0  ;;  %v116_v45 = vmul.f32 %v100_v36, %v100_v36  ;;  %v88_v47 = vsub.f32 %v40_v37, %v56_v38  ;;  %v46_v9 = vld [vmem:[%s340_s0 + $0x78] sm:$0xff] }
   0xc   :  { %v102_v48 = vsel %vm70_vm7, 0.0, %v86_v35  ;;  %vm72_vm9 = vcmp.eq.f32.partialorder %v56_v38, -1.0  ;;  %v117_v51 = vmul.f32 %v101_v42, %v101_v42  ;;  %v89_v53 = vsub.f32 %v41_v43, %v57_v44  ;;  %v62_v10 = vld [vmem:[%s341_s1 + $0x78] sm:$0xff] }
   0xd   :  { %v196_v46 = vadd.f32 %v195_v40, %v114_v33  ;;  %v103_v54 = vsel %vm71_vm8, 0.0, %v87_v41  ;;  %vm73_vm10 = vcmp.eq.f32.partialorder %v57_v44, -1.0  ;;  %v118_v57 = vmul.f32 %v102_v48, %v102_v48 }
   0xe   :  { %v90_v59 = vsub.f32 %v42_v49, %v58_v50  ;;  %v104_v60 = vsel %vm72_vm9, 0.0, %v88_v47  ;;  %vm74_vm11 = vcmp.eq.f32.partialorder %v58_v50, -1.0  ;;  %v119_v63 = vmul.f32 %v103_v54, %v103_v54 }
   0xf   :  { %v197_v52 = vadd.f32 %v196_v46, %v115_v39  ;;  %v91_v1 = vsub.f32 %v43_v55, %v59_v56  ;;  %v105_v2 = vsel %vm73_vm10, 0.0, %v89_v53  ;;  %vm75_vm12 = vcmp.eq.f32.partialorder %v59_v56, -1.0 }
  0x10   :  { %v120_v5 = vmul.f32 %v104_v60, %v104_v60  ;;  %v92_v7 = vsub.f32 %v44_v61, %v60_v62  ;;  %v106_v8 = vsel %vm74_vm11, 0.0, %v90_v59  ;;  %vm76_vm13 = vcmp.eq.f32.partialorder %v60_v62, -1.0 }
  0x11   :  { %v198_v58 = vadd.f32 %v197_v52, %v116_v45  ;;  %v121_v11 = vmul.f32 %v105_v2, %v105_v2  ;;  %v93_v13 = vsub.f32 %v45_v3, %v61_v4  ;;  %v107_v14 = vsel %vm75_vm12, 0.0, %v91_v1 }
  0x12   :  { %vm77_vm14 = vcmp.eq.f32.partialorder %v61_v4, -1.0  ;;  %v122_v15 = vmul.f32 %v106_v8, %v106_v8  ;;  %v94_v17 = vsub.f32 %v46_v9, %v62_v10  ;;  %v108_v18 = vsel %vm76_vm13, 0.0, %v92_v7 }
  0x13   :  { %v199_v0 = vadd.f32 %v198_v58, %v117_v51  ;;  %vm78_vm15 = vcmp.eq.f32.partialorder %v62_v10, -1.0  ;;  %v123_v19 = vmul.f32 %v107_v14, %v107_v14  ;;  %v109_v21 = vsel %vm77_vm14, 0.0, %v93_v13 }
  0x14   :  { %v124_v22 = vmul.f32 %v108_v18, %v108_v18  ;;  %v110_v24 = vsel %vm78_vm15, 0.0, %v94_v17  ;;  %v125_v25 = vmul.f32 %v109_v21, %v109_v21 }
  0x15   :  { %v200_v6 = vadd.f32 %v199_v0, %v118_v57  ;;  %v126_v27 = vmul.f32 %v110_v24, %v110_v24 }
  0x17   :  { %v201_v12 = vadd.f32 %v200_v6, %v119_v63 }
  0x19   :  { %v202_v16 = vadd.f32 %v201_v12, %v120_v5 }
  0x1b   :  { %v203_v20 = vadd.f32 %v202_v16, %v121_v11 }
  0x1d   :  { %v204_v23 = vadd.f32 %v203_v20, %v122_v15 }
  0x1f   :  { %v205_v26 = vadd.f32 %v204_v23, %v123_v19 }
  0x21   :  { %v206_v28 = vadd.f32 %v205_v26, %v124_v22 }
  0x23   :  { %v207_v29 = vadd.f32 %v206_v28, %v125_v25 }
  0x25   :  { %v208_v30 = vadd.f32 %v207_v29, %v126_v27 }
  0x27   :  { %209 = vadd.xlane.f32.xlu0 %v208_v30 }
  0xb4   :  { %v210_v31 = vpop.xlane.xlu0 %209 }
  0xb5   :  { %v211_v32 = vrot.slane %v210_v31, 4 }
  0xb7   :  { %v212_v33 = vadd.f32 %v211_v32, %v210_v31 }
  0xb9   :  { %v213_v34 = vrot.slane %v212_v33, 2 }
  0xbb   :  { %v214_v35 = vadd.f32 %v213_v34, %v212_v33 }
  0xbd   :  { %v215_v36 = vrot.slane %v214_v35, 1 }
  0xbf   :  { %v216_v37 = vadd.f32 %v215_v36, %v214_v35 }
  0xc1   :  { %224 = vpush %v216_v37 }
  0xf2   :  { %s225_s0 = spop %224 }
  0xf3   :  { %v218_v38 = vstv %s225_s0 }
  0xf4   :  { %219 = vst [vmem:[%s342_s2] sm:$0xff] %v218_v38 }

</bundles_post_ra>
